<compile_context>
chip_gen: v7x
topology: tpu7x:2x2x1
jax: 0.10.0
libtpu: 0.0.40
codegen_flags: <defaults>
</compile_context>

<pallas_src>
import jax
import jax.numpy as jnp
import numpy as np
from jax import lax
from jax.experimental import pallas as pl
from jax.experimental.pallas import tpu as pltpu

TB = 128       # batch tile = output lane width
LANES = 128    # TPU lane count
UNROLL = 8     # manual unroll factor of the gather loop


def cf_kernel(user_ids_ref, item_ids_ref,      # scalar-prefetch ids (SMEM)
              user_tab_ref, item_tab_ref,      # embedding tables (VMEM, F padded)
              out_ref,                         # (1, TB) lane-dense output tile
              prod_scratch):                   # (TB, F_pad) VMEM scratch
    tb = out_ref.shape[1]
    f_pad = prod_scratch.shape[1]
    b0 = pl.program_id(0) * tb

    # Gather + fused elementwise product, UNROLL rows per loop iteration so
    # the scheduler gets a block of independent loads/stores to interleave.
    def gather_chunk(c, carry):
        row0 = pl.multiple_of(c * UNROLL, UNROLL)
        for j in range(UNROLL):
            uid = user_ids_ref[b0 + row0 + j]
            iid = item_ids_ref[b0 + row0 + j]
            # Full-lane (1, F_pad) rows: ids are trusted (no bounds check on
            # VMEM dynamic indexing).
            prod_scratch[row0 + j, :] = user_tab_ref[uid, :] * item_tab_ref[iid, :]
        return carry

    lax.fori_loop(0, tb // UNROLL, gather_chunk, 0)

    prod = prod_scratch[...]                              # (TB, F_pad) in vregs
    ones_rows = jnp.ones((8, f_pad), jnp.float32)
    # (8, F_pad) @ (F_pad, TB) -> (8, TB): one tiny MXU op reduces over the
    # factor dim AND produces the result lane-dense; keep row 0.
    sums = jnp.dot(ones_rows, prod.T, preferred_element_type=jnp.float32)
    out_ref[...] = sums[0:1, :]


def collaborative_filtering(user_ids, item_ids, user_emb, item_emb):
    """Pallas equivalent of CollaborativeFiltering.forward(user, item)."""
    B = user_ids.shape[0]
    n_users, F = user_emb.shape
    n_items, F2 = item_emb.shape
    assert F == F2

    # Zero-pad the factor dim to a multiple of the lane width (128).
    f_pad = pl.cdiv(F, LANES) * LANES
    user_tab = jnp.pad(user_emb.astype(jnp.float32), ((0, 0), (0, f_pad - F)))
    item_tab = jnp.pad(item_emb.astype(jnp.float32), ((0, 0), (0, f_pad - F)))

    # Pad the batch to a multiple of the tile; padded ids point at row 0 and
    # their outputs are sliced off below.
    num_tiles = pl.cdiv(B, TB)
    b_pad = num_tiles * TB
    uid = jnp.pad(user_ids.astype(jnp.int32), (0, b_pad - B))
    iid = jnp.pad(item_ids.astype(jnp.int32), (0, b_pad - B))

    out = pl.pallas_call(
        cf_kernel,
        # Lane-dense output slab: (num_tiles, 1, TB), reshaped to (B,) below.
        out_shape=jax.ShapeDtypeStruct((num_tiles, 1, TB), jnp.float32),
        grid_spec=pltpu.PrefetchScalarGridSpec(
            num_scalar_prefetch=2,          # user ids, item ids -> SMEM
            grid=(num_tiles,),
            in_specs=[
                # Small tables fully resident in VMEM (constant index map).
                pl.BlockSpec((n_users, f_pad), lambda i, u, it: (0, 0)),
                pl.BlockSpec((n_items, f_pad), lambda i, u, it: (0, 0)),
            ],
            out_specs=pl.BlockSpec((None, 1, TB), lambda i, u, it: (i, 0, 0)),
            scratch_shapes=[pltpu.VMEM((TB, f_pad), jnp.float32)],
        ),
        compiler_params=pltpu.CompilerParams(
            dimension_semantics=("parallel",)),
    )(uid, iid, user_tab, item_tab)

    return out.reshape(b_pad)[:B]


if __name__ == "__main__":
    key = jax.random.PRNGKey(0)
    k_ue, k_ie, k_u, k_i = jax.random.split(key, 4)

    # Module __init__ shapes: user_emb (n_users, n_factors),
    #                         item_emb (n_items, n_factors), init ~ U(0, 0.5)
    n_users, n_items, n_factors = 64, 48, 32
    B = 8

    user_emb = jax.random.uniform(k_ue, (n_users, n_factors),
                                  dtype=jnp.float32, minval=0.0, maxval=0.5)
    item_emb = jax.random.uniform(k_ie, (n_items, n_factors),
                                  dtype=jnp.float32, minval=0.0, maxval=0.5)
    user = jax.random.randint(k_u, (B,), 0, n_users, dtype=jnp.int32)
    item = jax.random.randint(k_i, (B,), 0, n_items, dtype=jnp.int32)

    out = collaborative_filtering(user, item, user_emb, item_emb)
    jax.block_until_ready(out)

    ref = jnp.sum(user_emb[user] * item_emb[item], axis=1)
    assert out.shape == (B,)
    assert np.allclose(np.asarray(out), np.asarray(ref), rtol=5e-3, atol=1e-3)

    # Second check: batch spanning multiple tiles with a remainder.
    B2 = 200
    k_u2, k_i2 = jax.random.split(k_u)
    user2 = jax.random.randint(k_u2, (B2,), 0, n_users, dtype=jnp.int32)
    item2 = jax.random.randint(k_i2, (B2,), 0, n_items, dtype=jnp.int32)
    out2 = collaborative_filtering(user2, item2, user_emb, item_emb)
    jax.block_until_ready(out2)
    ref2 = jnp.sum(user_emb[user2] * item_emb[item2], axis=1)
    assert out2.shape == (B2,)
    assert np.allclose(np.asarray(out2), np.asarray(ref2), rtol=5e-3, atol=1e-3)

    print("KERNEL_OK")
</pallas_src>

<mosaic_0001>
module attributes {stable_mosaic.version = 11 : i64} {
  func.func @cf_kernel(%arg0: i32, %arg1: memref<128xi32, #tpu.memory_space<smem>>, %arg2: memref<128xi32, #tpu.memory_space<smem>>, %arg3: memref<64x128xf32, #tpu.memory_space<vmem>>, %arg4: memref<48x128xf32, #tpu.memory_space<vmem>>, %arg5: memref<1x1x128xf32, #tpu.memory_space<vmem>>, %arg6: memref<128x128xf32, #tpu.memory_space<vmem>>) attributes {dimension_semantics = [#tpu.dimension_semantics<parallel>], iteration_bounds = array<i64: 1>, scalar_prefetch = 2 : i64, scratch_operands = 1 : i64, tpu.core_type = #tpu.core_type<tc>, window_params = [{pipeline_mode = #tpu.pipeline_mode<synchronous>, transform_indices = @transform_0, window_bounds = array<i64: 64, 128>}, {pipeline_mode = #tpu.pipeline_mode<synchronous>, transform_indices = @transform_1, window_bounds = array<i64: 48, 128>}, {transform_indices = @transform_2, window_bounds = array<i64: 1, 1, 128>}]} {
    %c128_i32 = arith.constant 128 : i32
    %0 = arith.muli %arg0, %c128_i32 : i32
    %c0_i32 = arith.constant 0 : i32
    %c16_i32 = arith.constant 16 : i32
    %1 = arith.addi %c0_i32, %c16_i32 : i32
    %c1_i32 = arith.constant 1 : i32
    scf.for %arg7 = %c0_i32 to %1 step %c1_i32  : i32 {
      %c8_i32 = arith.constant 8 : i32
      %10 = arith.muli %arg7, %c8_i32 : i32
      %11 = tpu.assume_multiple %10, 8 : i32
      %12 = arith.addi %0, %11 : i32
      %c0_i32_6 = arith.constant 0 : i32
      %13 = arith.addi %12, %c0_i32_6 : i32
      %14 = arith.index_cast %13 : i32 to index
      %15 = memref.load %arg1[%14] : memref<128xi32, #tpu.memory_space<smem>>
      %16 = arith.addi %0, %11 : i32
      %c0_i32_7 = arith.constant 0 : i32
      %17 = arith.addi %16, %c0_i32_7 : i32
      %18 = arith.index_cast %17 : i32 to index
      %19 = memref.load %arg2[%18] : memref<128xi32, #tpu.memory_space<smem>>
      %20 = arith.index_cast %15 : i32 to index
      %c0_8 = arith.constant 0 : index
      %21 = vector.load %arg3[%20, %c0_8] : memref<64x128xf32, #tpu.memory_space<vmem>>, vector<1x128xf32>
      %22 = vector.shape_cast %21 : vector<1x128xf32> to vector<128xf32>
      %23 = arith.index_cast %19 : i32 to index
      %c0_9 = arith.constant 0 : index
      %24 = vector.load %arg4[%23, %c0_9] : memref<48x128xf32, #tpu.memory_space<vmem>>, vector<1x128xf32>
      %25 = vector.shape_cast %24 : vector<1x128xf32> to vector<128xf32>
      %26 = arith.mulf %22, %25 : vector<128xf32>
      %c0_i32_10 = arith.constant 0 : i32
      %27 = arith.addi %11, %c0_i32_10 : i32
      %28 = arith.index_cast %27 : i32 to index
      %c0_11 = arith.constant 0 : index
      %29 = vector.load %arg6[%28, %c0_11] : memref<128x128xf32, #tpu.memory_space<vmem>>, vector<1x128xf32>
      %30 = vector.shape_cast %29 : vector<1x128xf32> to vector<128xf32>
      %31 = vector.shape_cast %26 : vector<128xf32> to vector<1x128xf32>
      tpu.vector_store %arg6[%28, %c0_11], %31 {strides = array<i32>} : memref<128x128xf32, #tpu.memory_space<vmem>>, vector<1x128xf32>,
      %32 = arith.addi %0, %11 : i32
      %c1_i32_12 = arith.constant 1 : i32
      %33 = arith.addi %32, %c1_i32_12 : i32
      %34 = arith.index_cast %33 : i32 to index
      %35 = memref.load %arg1[%34] : memref<128xi32, #tpu.memory_space<smem>>
      %36 = arith.addi %0, %11 : i32
      %c1_i32_13 = arith.constant 1 : i32
      %37 = arith.addi %36, %c1_i32_13 : i32
      %38 = arith.index_cast %37 : i32 to index
      %39 = memref.load %arg2[%38] : memref<128xi32, #tpu.memory_space<smem>>
      %40 = arith.index_cast %35 : i32 to index
      %c0_14 = arith.constant 0 : index
      %41 = vector.load %arg3[%40, %c0_14] : memref<64x128xf32, #tpu.memory_space<vmem>>, vector<1x128xf32>
      %42 = vector.shape_cast %41 : vector<1x128xf32> to vector<128xf32>
      %43 = arith.index_cast %39 : i32 to index
      %c0_15 = arith.constant 0 : index
      %44 = vector.load %arg4[%43, %c0_15] : memref<48x128xf32, #tpu.memory_space<vmem>>, vector<1x128xf32>
      %45 = vector.shape_cast %44 : vector<1x128xf32> to vector<128xf32>
      %46 = arith.mulf %42, %45 : vector<128xf32>
      %c1_i32_16 = arith.constant 1 : i32
      %47 = arith.addi %11, %c1_i32_16 : i32
      %48 = arith.index_cast %47 : i32 to index
      %c0_17 = arith.constant 0 : index
      %49 = vector.load %arg6[%48, %c0_17] : memref<128x128xf32, #tpu.memory_space<vmem>>, vector<1x128xf32>
      %50 = vector.shape_cast %49 : vector<1x128xf32> to vector<128xf32>
      %51 = vector.shape_cast %46 : vector<128xf32> to vector<1x128xf32>
      tpu.vector_store %arg6[%48, %c0_17], %51 {strides = array<i32>} : memref<128x128xf32, #tpu.memory_space<vmem>>, vector<1x128xf32>,
      %52 = arith.addi %0, %11 : i32
      %c2_i32 = arith.constant 2 : i32
      %53 = arith.addi %52, %c2_i32 : i32
      %54 = arith.index_cast %53 : i32 to index
      %55 = memref.load %arg1[%54] : memref<128xi32, #tpu.memory_space<smem>>
      %56 = arith.addi %0, %11 : i32
      %c2_i32_18 = arith.constant 2 : i32
      %57 = arith.addi %56, %c2_i32_18 : i32
      %58 = arith.index_cast %57 : i32 to index
      %59 = memref.load %arg2[%58] : memref<128xi32, #tpu.memory_space<smem>>
      %60 = arith.index_cast %55 : i32 to index
      %c0_19 = arith.constant 0 : index
      %61 = vector.load %arg3[%60, %c0_19] : memref<64x128xf32, #tpu.memory_space<vmem>>, vector<1x128xf32>
      %62 = vector.shape_cast %61 : vector<1x128xf32> to vector<128xf32>
      %63 = arith.index_cast %59 : i32 to index
      %c0_20 = arith.constant 0 : index
      %64 = vector.load %arg4[%63, %c0_20] : memref<48x128xf32, #tpu.memory_space<vmem>>, vector<1x128xf32>
      %65 = vector.shape_cast %64 : vector<1x128xf32> to vector<128xf32>
      %66 = arith.mulf %62, %65 : vector<128xf32>
      %c2_i32_21 = arith.constant 2 : i32
      %67 = arith.addi %11, %c2_i32_21 : i32
      %68 = arith.index_cast %67 : i32 to index
      %c0_22 = arith.constant 0 : index
      %69 = vector.load %arg6[%68, %c0_22] : memref<128x128xf32, #tpu.memory_space<vmem>>, vector<1x128xf32>
      %70 = vector.shape_cast %69 : vector<1x128xf32> to vector<128xf32>
      %71 = vector.shape_cast %66 : vector<128xf32> to vector<1x128xf32>
      tpu.vector_store %arg6[%68, %c0_22], %71 {strides = array<i32>} : memref<128x128xf32, #tpu.memory_space<vmem>>, vector<1x128xf32>,
      %72 = arith.addi %0, %11 : i32
      %c3_i32 = arith.constant 3 : i32
      %73 = arith.addi %72, %c3_i32 : i32
      %74 = arith.index_cast %73 : i32 to index
      %75 = memref.load %arg1[%74] : memref<128xi32, #tpu.memory_space<smem>>
      %76 = arith.addi %0, %11 : i32
      %c3_i32_23 = arith.constant 3 : i32
      %77 = arith.addi %76, %c3_i32_23 : i32
      %78 = arith.index_cast %77 : i32 to index
      %79 = memref.load %arg2[%78] : memref<128xi32, #tpu.memory_space<smem>>
      %80 = arith.index_cast %75 : i32 to index
      %c0_24 = arith.constant 0 : index
      %81 = vector.load %arg3[%80, %c0_24] : memref<64x128xf32, #tpu.memory_space<vmem>>, vector<1x128xf32>
      %82 = vector.shape_cast %81 : vector<1x128xf32> to vector<128xf32>
      %83 = arith.index_cast %79 : i32 to index
      %c0_25 = arith.constant 0 : index
      %84 = vector.load %arg4[%83, %c0_25] : memref<48x128xf32, #tpu.memory_space<vmem>>, vector<1x128xf32>
      %85 = vector.shape_cast %84 : vector<1x128xf32> to vector<128xf32>
      %86 = arith.mulf %82, %85 : vector<128xf32>
      %c3_i32_26 = arith.constant 3 : i32
      %87 = arith.addi %11, %c3_i32_26 : i32
      %88 = arith.index_cast %87 : i32 to index
      %c0_27 = arith.constant 0 : index
      %89 = vector.load %arg6[%88, %c0_27] : memref<128x128xf32, #tpu.memory_space<vmem>>, vector<1x128xf32>
      %90 = vector.shape_cast %89 : vector<1x128xf32> to vector<128xf32>
      %91 = vector.shape_cast %86 : vector<128xf32> to vector<1x128xf32>
      tpu.vector_store %arg6[%88, %c0_27], %91 {strides = array<i32>} : memref<128x128xf32, #tpu.memory_space<vmem>>, vector<1x128xf32>,
      %92 = arith.addi %0, %11 : i32
      %c4_i32 = arith.constant 4 : i32
      %93 = arith.addi %92, %c4_i32 : i32
      %94 = arith.index_cast %93 : i32 to index
      %95 = memref.load %arg1[%94] : memref<128xi32, #tpu.memory_space<smem>>
      %96 = arith.addi %0, %11 : i32
      %c4_i32_28 = arith.constant 4 : i32
      %97 = arith.addi %96, %c4_i32_28 : i32
      %98 = arith.index_cast %97 : i32 to index
      %99 = memref.load %arg2[%98] : memref<128xi32, #tpu.memory_space<smem>>
      %100 = arith.index_cast %95 : i32 to index
      %c0_29 = arith.constant 0 : index
      %101 = vector.load %arg3[%100, %c0_29] : memref<64x128xf32, #tpu.memory_space<vmem>>, vector<1x128xf32>
      %102 = vector.shape_cast %101 : vector<1x128xf32> to vector<128xf32>
      %103 = arith.index_cast %99 : i32 to index
      %c0_30 = arith.constant 0 : index
      %104 = vector.load %arg4[%103, %c0_30] : memref<48x128xf32, #tpu.memory_space<vmem>>, vector<1x128xf32>
      %105 = vector.shape_cast %104 : vector<1x128xf32> to vector<128xf32>
      %106 = arith.mulf %102, %105 : vector<128xf32>
      %c4_i32_31 = arith.constant 4 : i32
      %107 = arith.addi %11, %c4_i32_31 : i32
      %108 = arith.index_cast %107 : i32 to index
      %c0_32 = arith.constant 0 : index
      %109 = vector.load %arg6[%108, %c0_32] : memref<128x128xf32, #tpu.memory_space<vmem>>, vector<1x128xf32>
      %110 = vector.shape_cast %109 : vector<1x128xf32> to vector<128xf32>
      %111 = vector.shape_cast %106 : vector<128xf32> to vector<1x128xf32>
      tpu.vector_store %arg6[%108, %c0_32], %111 {strides = array<i32>} : memref<128x128xf32, #tpu.memory_space<vmem>>, vector<1x128xf32>,
      %112 = arith.addi %0, %11 : i32
      %c5_i32 = arith.constant 5 : i32
      %113 = arith.addi %112, %c5_i32 : i32
      %114 = arith.index_cast %113 : i32 to index
      %115 = memref.load %arg1[%114] : memref<128xi32, #tpu.memory_space<smem>>
      %116 = arith.addi %0, %11 : i32
      %c5_i32_33 = arith.constant 5 : i32
      %117 = arith.addi %116, %c5_i32_33 : i32
      %118 = arith.index_cast %117 : i32 to index
      %119 = memref.load %arg2[%118] : memref<128xi32, #tpu.memory_space<smem>>
      %120 = arith.index_cast %115 : i32 to index
      %c0_34 = arith.constant 0 : index
      %121 = vector.load %arg3[%120, %c0_34] : memref<64x128xf32, #tpu.memory_space<vmem>>, vector<1x128xf32>
      %122 = vector.shape_cast %121 : vector<1x128xf32> to vector<128xf32>
      %123 = arith.index_cast %119 : i32 to index
      %c0_35 = arith.constant 0 : index
      %124 = vector.load %arg4[%123, %c0_35] : memref<48x128xf32, #tpu.memory_space<vmem>>, vector<1x128xf32>
      %125 = vector.shape_cast %124 : vector<1x128xf32> to vector<128xf32>
      %126 = arith.mulf %122, %125 : vector<128xf32>
      %c5_i32_36 = arith.constant 5 : i32
      %127 = arith.addi %11, %c5_i32_36 : i32
      %128 = arith.index_cast %127 : i32 to index
      %c0_37 = arith.constant 0 : index
      %129 = vector.load %arg6[%128, %c0_37] : memref<128x128xf32, #tpu.memory_space<vmem>>, vector<1x128xf32>
      %130 = vector.shape_cast %129 : vector<1x128xf32> to vector<128xf32>
      %131 = vector.shape_cast %126 : vector<128xf32> to vector<1x128xf32>
      tpu.vector_store %arg6[%128, %c0_37], %131 {strides = array<i32>} : memref<128x128xf32, #tpu.memory_space<vmem>>, vector<1x128xf32>,
      %132 = arith.addi %0, %11 : i32
      %c6_i32 = arith.constant 6 : i32
      %133 = arith.addi %132, %c6_i32 : i32
      %134 = arith.index_cast %133 : i32 to index
      %135 = memref.load %arg1[%134] : memref<128xi32, #tpu.memory_space<smem>>
      %136 = arith.addi %0, %11 : i32
      %c6_i32_38 = arith.constant 6 : i32
      %137 = arith.addi %136, %c6_i32_38 : i32
      %138 = arith.index_cast %137 : i32 to index
      %139 = memref.load %arg2[%138] : memref<128xi32, #tpu.memory_space<smem>>
      %140 = arith.index_cast %135 : i32 to index
      %c0_39 = arith.constant 0 : index
      %141 = vector.load %arg3[%140, %c0_39] : memref<64x128xf32, #tpu.memory_space<vmem>>, vector<1x128xf32>
      %142 = vector.shape_cast %141 : vector<1x128xf32> to vector<128xf32>
      %143 = arith.index_cast %139 : i32 to index
      %c0_40 = arith.constant 0 : index
      %144 = vector.load %arg4[%143, %c0_40] : memref<48x128xf32, #tpu.memory_space<vmem>>, vector<1x128xf32>
      %145 = vector.shape_cast %144 : vector<1x128xf32> to vector<128xf32>
      %146 = arith.mulf %142, %145 : vector<128xf32>
      %c6_i32_41 = arith.constant 6 : i32
      %147 = arith.addi %11, %c6_i32_41 : i32
      %148 = arith.index_cast %147 : i32 to index
      %c0_42 = arith.constant 0 : index
      %149 = vector.load %arg6[%148, %c0_42] : memref<128x128xf32, #tpu.memory_space<vmem>>, vector<1x128xf32>
      %150 = vector.shape_cast %149 : vector<1x128xf32> to vector<128xf32>
      %151 = vector.shape_cast %146 : vector<128xf32> to vector<1x128xf32>
      tpu.vector_store %arg6[%148, %c0_42], %151 {strides = array<i32>} : memref<128x128xf32, #tpu.memory_space<vmem>>, vector<1x128xf32>,
      %152 = arith.addi %0, %11 : i32
      %c7_i32 = arith.constant 7 : i32
      %153 = arith.addi %152, %c7_i32 : i32
      %154 = arith.index_cast %153 : i32 to index
      %155 = memref.load %arg1[%154] : memref<128xi32, #tpu.memory_space<smem>>
      %156 = arith.addi %0, %11 : i32
      %c7_i32_43 = arith.constant 7 : i32
      %157 = arith.addi %156, %c7_i32_43 : i32
      %158 = arith.index_cast %157 : i32 to index
      %159 = memref.load %arg2[%158] : memref<128xi32, #tpu.memory_space<smem>>
      %160 = arith.index_cast %155 : i32 to index
      %c0_44 = arith.constant 0 : index
      %161 = vector.load %arg3[%160, %c0_44] : memref<64x128xf32, #tpu.memory_space<vmem>>, vector<1x128xf32>
      %162 = vector.shape_cast %161 : vector<1x128xf32> to vector<128xf32>
      %163 = arith.index_cast %159 : i32 to index
      %c0_45 = arith.constant 0 : index
      %164 = vector.load %arg4[%163, %c0_45] : memref<48x128xf32, #tpu.memory_space<vmem>>, vector<1x128xf32>
      %165 = vector.shape_cast %164 : vector<1x128xf32> to vector<128xf32>
      %166 = arith.mulf %162, %165 : vector<128xf32>
      %c7_i32_46 = arith.constant 7 : i32
      %167 = arith.addi %11, %c7_i32_46 : i32
      %168 = arith.index_cast %167 : i32 to index
      %c0_47 = arith.constant 0 : index
      %169 = vector.load %arg6[%168, %c0_47] : memref<128x128xf32, #tpu.memory_space<vmem>>, vector<1x128xf32>
      %170 = vector.shape_cast %169 : vector<1x128xf32> to vector<128xf32>
      %171 = vector.shape_cast %166 : vector<128xf32> to vector<1x128xf32>
      tpu.vector_store %arg6[%168, %c0_47], %171 {strides = array<i32>} : memref<128x128xf32, #tpu.memory_space<vmem>>, vector<1x128xf32>,
    }
    %c16_i32_0 = arith.constant 16 : i32
    %c0 = arith.constant 0 : index
    %c0_1 = arith.constant 0 : index
    %2 = vector.load %arg6[%c0, %c0_1] : memref<128x128xf32, #tpu.memory_space<vmem>>, vector<128x128xf32>
    %cst = arith.constant 1.000000e+00 : f32
    %3 = vector.broadcast %cst : f32 to vector<8x128xf32>
    %4 = tpu.transpose %2, [1, 0] : vector<128x128xf32> -> vector<128x128xf32>
    %cst_2 = arith.constant dense<0.000000e+00> : vector<8x128xf32>
    %5 = tpu.matmul %3, %4, %cst_2 {dimension_numbers = #tpu.dot_dimension_numbers<[1], [0], [0], [1], [0, 0, 1, 1], [], []>} : vector<8x128xf32>, vector<128x128xf32>, vector<8x128xf32> -> vector<8x128xf32>
    %6 = vector.extract_strided_slice %5 {offsets = [0, 0], sizes = [1, 128], strides = [1, 1]} : vector<8x128xf32> to vector<1x128xf32>
    %c0_3 = arith.constant 0 : index
    %c0_4 = arith.constant 0 : index
    %c0_5 = arith.constant 0 : index
    %7 = vector.load %arg5[%c0_3, %c0_4, %c0_5] : memref<1x1x128xf32, #tpu.memory_space<vmem>>, vector<1x1x128xf32>
    %8 = vector.shape_cast %7 : vector<1x1x128xf32> to vector<1x128xf32>
    %9 = vector.shape_cast %6 : vector<1x128xf32> to vector<1x1x128xf32>
    tpu.vector_store %arg5[%c0_3, %c0_4, %c0_5], %9 {strides = array<i32>} : memref<1x1x128xf32, #tpu.memory_space<vmem>>, vector<1x1x128xf32>,
    return
  }
  func.func @transform_0(%arg0: i32, %arg1: memref<128xi32, #tpu.memory_space<smem>>, %arg2: memref<128xi32, #tpu.memory_space<smem>>) -> (i32, i32) {
    %c0_i32 = arith.constant 0 : i32
    %c0_i32_0 = arith.constant 0 : i32
    %c0_i32_1 = arith.constant 0 : i32
    return %c0_i32, %c0_i32_0 : i32, i32
  }
  func.func @transform_1(%arg0: i32, %arg1: memref<128xi32, #tpu.memory_space<smem>>, %arg2: memref<128xi32, #tpu.memory_space<smem>>) -> (i32, i32) {
    %c0_i32 = arith.constant 0 : i32
    %c0_i32_0 = arith.constant 0 : i32
    %c0_i32_1 = arith.constant 0 : i32
    return %c0_i32, %c0_i32_0 : i32, i32
  }
  func.func @transform_2(%arg0: i32, %arg1: memref<128xi32, #tpu.memory_space<smem>>, %arg2: memref<128xi32, #tpu.memory_space<smem>>) -> (i32, i32, i32) {
    %c0_i32 = arith.constant 0 : i32
    %c0_i32_0 = arith.constant 0 : i32
    %c0_i32_1 = arith.constant 0 : i32
    return %arg0, %c0_i32, %c0_i32_0 : i32, i32, i32
  }
}

</mosaic_0001>

<bundles_post_ra>
// kernel: tpu_custom_call.1
= control target key start
LH: loop header
LB: loop body
LE: loop exit
PB: predicated region body
PF: predicated region fallthrough
CT: control target
= control target key end

     0   :  { %s624_s0 = inlined_call_operand.hbm [shape: s32[128], index: 0, kind: input, shape index: {}]   ;;  %s625_s2 = inlined_call_operand.hbm [shape: f32[64,128], index: 2, kind: input, shape index: {}]   ;;  %s626_s3 = inlined_call_operand.hbm [shape: f32[48,128], index: 3, kind: input, shape index: {}]   ;;  %s627_s4 = inlined_call_operand.hbm [shape: f32[1,1,128], index: 4, kind: output, shape index: {}]   ;;  %s628_s1 = inlined_call_operand.vmem [shape: s32[128], index: 1, kind: input, shape index: {}]  }
   0x1   :  { %s402_s17 = scalar_lea.hbm %s624_s0, 16 }
   0x2   :  { %p403_p0 = scmp.ne.s32.totalorder %s624_s0, %s402_s17  ;;  %p406_p1 = scmp.lt.u32.totalorder %s402_s17, %s624_s0 }
   0x4   :  { %p408_p2 = pnand %p406_p1, %p403_p0 }
   0x6   :  { %411 = shalt.err (!%p408_p2)  }
   0x7   :  { %s506_s22 = smov [#allocation4]   ;;  %s11_s27 = sshll.u32 %s628_s1, 4  ;;  %s12_s27 = int_to_ptr.vmem [resolvable:$true] %s11_s27 }
   0x8   :  { %10 = dma.hbm_to_smem %s624_s0, 16, %s506_s22, [#allocation3] }
   0x9   :  { %s412_s28 = scalar_lea.vmem %s12_s27, 16  ;;  %p417_p4 = scmp.lt.s32.totalorder %s12_s27, %s12_s27 }
   0xa   :  { %p413_p3 = scmp.ne.s32.totalorder %s12_s27, %s412_s28  ;;  %p418_p5 = scmp.lt.s32.totalorder %s412_s28, %s412_s28 }
   0xc   :  { %p419_p6 = por %p418_p5, %p417_p4 }
   0xe   :  { %p420_p7 = pnand %p419_p6, %p413_p3 }
  0x10   :  { %423 = shalt.err (!%p420_p7)  }
  0x11   :  { %s507_s29 = smov [#allocation5]  }
  0x12   :  { %14 = dma.vmem_to_smem %s12_s27, 16, %s507_s29, [#allocation3] }
  0x13   :  { %494 = dma.done.wait [#allocation3], 32 }
  0x14   :  { %495 = vsyncadd [#allocation3], 4294967264 }
  0x15   :  { %16 = sfence }
  0x16   :  { %17 = vsyncpa [#allocation7], 0 }
  0x17   :  { %18 = vsyncpa [#allocation10], 0 }
  0x18   :  { %19 = vsyncpa [#allocation8], 0  ;;  %s508_s0 = smov [#allocation6]   ;;  %s424_s6 = scalar_lea.hbm %s625_s2, 1024 }
  0x19   :  { %s25_s30 = sshll.u32 %s508_s0, 4  ;;  %p425_p8 = scmp.ne.s32.totalorder %s625_s2, %s424_s6  ;;  %s26_s30 = int_to_ptr.vmem [resolvable:$true] %s25_s30 }
  0x1a   :  { %p428_p9 = scmp.lt.u32.totalorder %s424_s6, %s625_s2 }
  0x1c   :  { %p430_p10 = pnand %p428_p9, %p425_p8 }
  0x1e   :  { %433 = shalt.err (!%p430_p10)
}
  0x1f   :  { %s434_s11 = scalar_lea.vmem %s26_s30, 1024  ;;  %p439_p12 = scmp.lt.s32.totalorder %s26_s30, %s26_s30 }
  0x20   :  { %p435_p11 = scmp.ne.s32.totalorder %s26_s30, %s434_s11  ;;  %p440_p13 = scmp.lt.s32.totalorder %s434_s11, %s434_s11 }
  0x22   :  { %p441_p0 = por %p440_p13, %p439_p12 }
  0x24   :  { %p442_p1 = pnand %p441_p0, %p435_p11 }
  0x26   :  { %445 = shalt.err (!%p442_p1)
}
  0x27   :  { %s509_s12 = smov 128   ;;  %s510_s13 = smov 8  }
  0x28   :  { %31 = dma.hbm_to_vmem [thread:$0]  %s625_s2, 1024, %s26_s30, [#allocation7], %s509_s12, %s509_s12, %s510_s13  }
  0x29   :  { %s511_s16 = smov [#allocation9]   ;;  %s446_s20 = scalar_lea.hbm %s626_s3, 768 }
  0x2a   :  { %s37_s17 = sshll.u32 %s511_s16, 4  ;;  %p447_p2 = scmp.ne.s32.totalorder %s626_s3, %s446_s20  ;;  %s38_s17 = int_to_ptr.vmem [resolvable:$true] %s37_s17 }
  0x2b   :  { %p450_p3 = scmp.lt.u32.totalorder %s446_s20, %s626_s3 }
  0x2d   :  { %p452_p4 = pnand %p450_p3, %p447_p2 }
  0x2f   :  { %455 = shalt.err (!%p452_p4)
}
  0x30   :  { %s456_s25 = scalar_lea.vmem %s38_s17, 768  ;;  %p461_p6 = scmp.lt.s32.totalorder %s38_s17, %s38_s17 }
  0x31   :  { %p457_p5 = scmp.ne.s32.totalorder %s38_s17, %s456_s25  ;;  %p462_p7 = scmp.lt.s32.totalorder %s456_s25, %s456_s25 }
  0x33   :  { %p463_p8 = por %p462_p7, %p461_p6 }
  0x35   :  { %p464_p9 = pnand %p463_p8, %p457_p5 }
  0x37   :  { %467 = shalt.err (!%p464_p9)
}
  0x38   :  { %43 = dma.hbm_to_vmem [thread:$0]  %s626_s3, 768, %s38_s17, [#allocation10], %s509_s12, %s509_s12, %s510_s13  }
  0x39   :  { %496 = dma.done.wait [#allocation7], 1024  }
  0x3a   :  { %497 = vsyncadd [#allocation7], 4294966272 }
  0x3b   :  { %498 = dma.done.wait [#allocation10], 768  }
  0x3c   :  { %499 = vsyncadd [#allocation10], 4294966528  ;;  %s581_s27 = smov 0  }
  0x3d LB: > { %s587_s28 = sshll.u32 %s504_s27, 3  ;;  %s56_s27 = sadd.s32 1, %s504_s27   ;;  %s504_s27 = sphi %s581_s27, %s56_s27  }
  0x3e   : > { %s59_s3 = sld [smem:[#allocation4 + %s587_s28]]  ;;  %s68_s0 = sadd.s32 1, %s587_s28 }
  0x3f   : > { %s60_s29 = sld [smem:[#allocation5 + %s587_s28]]  ;;  %s79_s5 = sadd.s32 2, %s587_s28 }
  0x40   : > { %s69_s30 = sld [smem:[#allocation4 + %s68_s0]]  ;;  %s90_s6 = sadd.s32 3, %s587_s28 }
  0x41   : > { %s70_s1 = sld [smem:[#allocation5 + %s68_s0]]  ;;  %s101_s13 = sadd.s32 4, %s587_s28 }
  0x42   : > { %s80_s7 = sld [smem:[#allocation4 + %s79_s5]]  ;;  %s112_s14 = sadd.s32 5, %s587_s28 }
  0x43   : > { %s81_s8 = sld [smem:[#allocation5 + %s79_s5]]  ;;  %s597_s19 = scalar_lea.vmem [#allocation2], %s587_s28 }
  0x44   : > { %s91_s9 = sld [smem:[#allocation4 + %s90_s6]]  ;;  %s61_s11 = scalar_lea.vmem [#allocation6], %s59_s3 }
  0x45   : > { %s92_s10 = sld [smem:[#allocation5 + %s90_s6]]  ;;  %v62_v0 = vld [vmem:[%s61_s11] sm:$0x1]  ;;  %s63_s12 = scalar_lea.vmem [#allocation9], %s60_s29 }
  0x46   : > { %v64_v1 = vld [vmem:[%s63_s12] sm:$0x1]  ;;  %s71_s15 = scalar_lea.vmem [#allocation6], %s69_s30  ;;  %s102_s17 = sld [smem:[#allocation4 + %s101_s13]] }
  0x47   : > { %v65_v2 = vmul.f32 %v64_v1, %v62_v0  ;;  %v72_v3 = vld [vmem:[%s71_s15] sm:$0x1]  ;;  %s73_s16 = scalar_lea.vmem [#allocation9], %s70_s1  ;;  %s103_s18 = sld [smem:[#allocation5 + %s101_s13]] }
  0x48   : > { %v74_v4 = vld [vmem:[%s73_s16] sm:$0x1]  ;;  %s82_s20 = scalar_lea.vmem [#allocation6], %s80_s7  ;;  %s113_s24 = sld [smem:[#allocation4 + %s112_s14]] }
  0x49   : > { %67 = vst [vmem:[%s597_s19] sm:$0x1] %v65_v2  ;;  %v75_v5 = vmul.f32 %v74_v4, %v72_v3  ;;  %v83_v6 = vld [vmem:[%s82_s20] sm:$0x1]  ;;  %s84_s21 = scalar_lea.vmem [#allocation9], %s81_s8  ;;  %s114_s25 = sld [smem:[#allocation5 + %s112_s14]] }
  0x4a   : > { %v85_v7 = vld [vmem:[%s84_s21] sm:$0x1]  ;;  %s93_s22 = scalar_lea.vmem [#allocation6], %s91_s9  ;;  %s123_s2 = sadd.s32 6, %s587_s28 }
  0x4b   : > { %294 = vst [vmem:[%s597_s19 + $0x1] sm:$0x1] %v75_v5  ;;  %v86_v8 = vmul.f32 %v85_v7, %v83_v6  ;;  %v94_v9 = vld [vmem:[%s93_s22] sm:$0x1]  ;;  %s95_s23 = scalar_lea.vmem [#allocation9], %s92_s10  ;;  %s134_s26 = sadd.s32 7, %s587_s28 }
  0x4c   : > { %v96_v10 = vld [vmem:[%s95_s23] sm:$0x1]  ;;  %s124_s3 = sld [smem:[#allocation4 + %s123_s2]]  ;;  %s104_s0 = scalar_lea.vmem [#allocation6], %s102_s17 }
  0x4d   : > { %v97_v11 = vmul.f32 %v96_v10, %v94_v9  ;;  %296 = vst [vmem:[%s597_s19 + $0x2] sm:$0x1] %v86_v8  ;;  %s125_s29 = sld [smem:[#allocation5 + %s123_s2]]  ;;  %v105_v12 = vld [vmem:[%s104_s0] sm:$0x1]  ;;  %s106_s30 = scalar_lea.vmem [#allocation9], %s103_s18 }
  0x4e   : > { %v107_v13 = vld [vmem:[%s106_s30] sm:$0x1]  ;;  %s135_s1 = sld [smem:[#allocation4 + %s134_s26]]  ;;  %s115_s6 = scalar_lea.vmem [#allocation6], %s113_s24 }
  0x4f   : > { %298 = vst [vmem:[%s597_s19 + $0x3] sm:$0x1] %v97_v11  ;;  %s136_s5 = sld [smem:[#allocation5 + %s134_s26]]  ;;  %v108_v14 = vmul.f32 %v107_v13, %v105_v12  ;;  %v116_v15 = vld [vmem:[%s115_s6] sm:$0x1]  ;;  %s117_s7 = scalar_lea.vmem [#allocation9], %s114_s25 }
  0x50   : > { %v118_v16 = vld [vmem:[%s117_s7] sm:$0x1]  ;;  %p53_p10 = scmp.ge.s32.totalorder %s56_s27, 16  }
  0x51   : > { %300 = vst [vmem:[%s597_s19 + $0x4] sm:$0x1] %v108_v14  ;;  %v119_v17 = vmul.f32 %v118_v16, %v116_v15  ;;  %v512_v26 = vmov (%p53_p10), 0.0|0.0   ;;  %vm513_vm0 = vmmov (%p53_p10), 0   ;;  %v514_v28 = vmov (%p53_p10), 0.0   ;;  %s516_s27 = smov (%p53_p10), [#allocation11]  }
  0x52   : > { %s126_s28 = scalar_lea.vmem [#allocation6], %s124_s3  ;;  %359 = vmatprep.subr.bf16.mxu0 (%p53_p10), %v512_v26  ;;  %356 = vmatprep.mubr.msk.f32.mxu0 (%p53_p10), %vm513_vm0, %v514_v28  ;;  %v515_v50 = vmov (%p53_p10), 1.0   ;;  %s238_s11 = sshll.u32 (%p53_p10), %s516_s27, 4  ;;  %s239_s11 = int_to_ptr.vmem [resolvable:$true] %s238_s11 }
  0x53   : > { %v127_v18 = vld [vmem:[%s126_s28] sm:$0x1]  ;;  %s128_s8 = scalar_lea.vmem [#allocation9], %s125_s29  ;;  %302 = vst [vmem:[%s597_s19 + $0x5] sm:$0x1] %v119_v17  ;;  %55 = sbr.rel (!%p53_p10) target bundleno = 61 (0x3d), region = 67 }
  0x54   : > { %v129_v19 = vld [vmem:[%s128_s8] sm:$0x1]  ;;  %s137_s9 = scalar_lea.vmem [#allocation6], %s135_s1  ;;  %s468_s12 = scalar_lea.vmem (%p53_p10), %s239_s11, 16 }
  0x55   : > { %v130_v20 = vmul.f32 %v129_v19, %v127_v18  ;;  %v138_v21 = vld [vmem:[%s137_s9] sm:$0x1]  ;;  %s139_s10 = scalar_lea.vmem [#allocation9], %s136_s5  ;;  %p469_p11 = scmp.ne.s32.totalorder (%p53_p10), %s239_s11, %s468_s12 }
  0x56   : > { %v140_v22 = vld [vmem:[%s139_s10] sm:$0x1]  ;;  %s472_s13 = scalar_lea.vmem (%p53_p10), %s239_s11, 32  ;;  %p473_p12 = scmp.lt.s32.totalorder (%p53_p10), %s239_s11, %s239_s11 }
  0x57   : > { %304 = vst [vmem:[%s597_s19 + $0x6] sm:$0x1] %v130_v20  ;;  %v141_v23 = vmul.f32 %v140_v22, %v138_v21  ;;  %p474_p13 = scmp.lt.s32.totalorder (%p53_p10), %s472_s13, %s468_s12 }
  0x59   : > { %306 = vst [vmem:[%s597_s19 + $0x7] sm:$0x1] %v141_v23  ;;  %p475_p0 = por (%p53_p10), %p474_p13, %p473_p12 }
  0x5b   :  { %p476_p1 = pnand %p475_p0, %p469_p11 }
  0x60   :  { %v145_v24 = vld [vmem:[#allocation2] sm:$0xff]  ;;  %v146_v25 = vld [vmem:[#allocation2 + $0x8] sm:$0xff]  ;;  %v147_v29 = vld [vmem:[#allocation2 + $0x10] sm:$0xff] }
  0x61   :  { %v360_v27 = vpack.c.bf16 %v146_v25, %v145_v24  ;;  %v148_v30 = vld [vmem:[#allocation2 + $0x18] sm:$0xff]  ;;  %v149_v32 = vld [vmem:[#allocation2 + $0x20] sm:$0xff]  ;;  %v150_v33 = vld [vmem:[#allocation2 + $0x28] sm:$0xff] }
  0x62   :  { %v363_v31 = vpack.c.bf16 %v148_v30, %v147_v29  ;;  %v366_v34 = vpack.c.bf16 %v150_v33, %v149_v32  ;;  %v151_v35 = vld [vmem:[#allocation2 + $0x30] sm:$0xff]  ;;  %v152_v36 = vld [vmem:[#allocation2 + $0x38] sm:$0xff]  ;;  %v153_v38 = vld [vmem:[#allocation2 + $0x40] sm:$0xff] }
  0x63   :  { %361 = vmatpush3.bf16.xpose.msra.mxu0 %v360_v27  ;;  %v369_v37 = vpack.c.bf16 %v152_v36, %v151_v35  ;;  %v154_v39 = vld [vmem:[#allocation2 + $0x48] sm:$0xff]  ;;  %v155_v41 = vld [vmem:[#allocation2 + $0x50] sm:$0xff]  ;;  %v156_v42 = vld [vmem:[#allocation2 + $0x58] sm:$0xff] }
  0x64   :  { %362 = vmatprep.subr.bf16.mxu0 %v512_v26  ;;  %v372_v40 = vpack.c.bf16 %v154_v39, %v153_v38  ;;  %v375_v43 = vpack.c.bf16 %v156_v42, %v155_v41  ;;  %v157_v44 = vld [vmem:[#allocation2 + $0x60] sm:$0xff]  ;;  %v158_v45 = vld [vmem:[#allocation2 + $0x68] sm:$0xff]  ;;  %v159_v47 = vld [vmem:[#allocation2 + $0x70] sm:$0xff] }
  0x65   :  { %v378_v46 = vpack.c.bf16 %v158_v45, %v157_v44  ;;  %v160_v48 = vld [vmem:[#allocation2 + $0x78] sm:$0xff] }
  0x66   :  { %v381_v49 = vpack.c.bf16 %v160_v48, %v159_v47 }
  0x6b   :  { %364 = vmatpush3.bf16.xpose.msra.mxu0 %v363_v31 }
  0x6c   :  { %365 = vmatprep.subr.bf16.mxu0 %v512_v26 }
  0x73   :  { %367 = vmatpush3.bf16.xpose.msra.mxu0 %v366_v34 }
  0x74   :  { %368 = vmatprep.subr.bf16.mxu0 %v512_v26 }
  0x7b   :  { %370 = vmatpush3.bf16.xpose.msra.mxu0 %v369_v37 }
  0x7c   :  { %371 = vmatprep.subr.bf16.mxu0 %v512_v26 }
  0x83   :  { %373 = vmatpush3.bf16.xpose.msra.mxu0 %v372_v40 }
  0x84   :  { %374 = vmatprep.subr.bf16.mxu0 %v512_v26 }
  0x8b   :  { %376 = vmatpush3.bf16.xpose.msra.mxu0 %v375_v43 }
  0x8c   :  { %377 = vmatprep.subr.bf16.mxu0 %v512_v26 }
  0x93   :  { %379 = vmatpush3.bf16.xpose.msra.mxu0 %v378_v46 }
  0x94   :  { %380 = vmatprep.subr.bf16.mxu0 %v512_v26 }
  0x9b   :  { %382 = vmatpush3.bf16.xpose.msra.mxu0 %v381_v49 }
  0xa2   :  { %357 = vmatmul.mubr.f32.vlgmr.msra.gmra.mrb[0].mxu0 %v515_v50 }
 0x175   :  { %v227_v51 = vpop.f32.mrb[0].mxu0 }
 0x176   :  { %231 = vst [vmem:[#allocation11] sm:$0x1] %v227_v51  ;;  %v358_v52 = vpop.f32.mrb[1].mxu0 }
 0x177   :  { %479 = shalt.err (!%p476_p1)
}
 0x178   :  { %s480_s16 = scalar_lea.hbm %s627_s4, 16 }
 0x179   :  { %p481_p2 = scmp.ne.s32.totalorder %s627_s4, %s480_s16  ;;  %p484_p3 = scmp.lt.u32.totalorder %s480_s16, %s627_s4 }
 0x17b   :  { %p486_p4 = pnand %p484_p3, %p481_p2 }
 0x17d   :  { %489 = shalt.err (!%p486_p4)
}
 0x17e   :  { %241 = dma.vmem_to_hbm [thread:$0]  %s239_s11, 16, %s627_s4, [#allocation8]  }
 0x17f   :  { %500 = dma.done.wait [#allocation8], 16  }
 0x180   :  { %501 = vsyncadd [#allocation8], 4294967280 }
 0x181   :  { %245 = vsyncpa [#allocation7], 1 }
 0x182   :  { %246 = vsyncpa [#allocation10], 1 }
 0x183   :  { %247 = vsyncpa [#allocation8], 1 }

</bundles_post_ra>
